<compile_context>
chip_gen: v7x
topology: tpu7x:2x2x1
jax: 0.10.0
libtpu: 0.0.40
codegen_flags: <defaults>
</compile_context>

<pallas_src>
import jax
import jax.numpy as jnp
from jax.experimental import pallas as pl
from jax.experimental.pallas import tpu as pltpu


def hybrid_cf_kernel(u_ids_ref, i_ids_ref, u_tab_ref, i_tab_ref,
                     w1u_ref, w1i_ref, b1_ref, w2_ref, b2_ref, out_ref):
    # u_ids_ref/i_ids_ref: [1, TB] int32        (per-tile index blocks)
    # u_tab_ref: [E, NU] bf16, i_tab_ref: [E, NI] bf16  (VMEM-resident tables^T)
    # w1u_ref/w1i_ref: [H, E] bf16               (W1 split + transposed)
    # b1_ref: [H, 1] f32   w2_ref: [H, 1] f32    b2_ref: [1] f32 (SMEM)
    # out_ref: [1, TB] f32                       (lane-dense output block)
    tb = out_ref.shape[1]
    cdt = u_tab_ref.dtype

    def gather_t(tab_ref, ids_row):
        # One-hot gather fused on the MXU: table^T[E,N] @ onehot[N,TB] -> [E,TB].
        # 0/1 weights are exact in bf16, so this reproduces the bf16 table rows
        # exactly (f32 accumulation of a single nonzero term).
        n = tab_ref.shape[1]
        iota = jax.lax.broadcasted_iota(jnp.int32, (n, tb), 0)
        onehot = jnp.where(ids_row == iota, 1.0, 0.0).astype(cdt)
        e_t = jnp.dot(tab_ref[...], onehot, preferred_element_type=jnp.float32)
        return e_t.astype(cdt)                       # exact (bf16 table rows)

    ue_t = gather_t(u_tab_ref, u_ids_ref[...])       # [E, TB]
    ie_t = gather_t(i_tab_ref, i_ids_ref[...])       # [E, TB]

    # fc1: (concat(u_e, i_e) @ W1)^T == W1u^T @ u_e^T + W1i^T @ i_e^T
    h_t = (jnp.dot(w1u_ref[...], ue_t, preferred_element_type=jnp.float32)
           + jnp.dot(w1i_ref[...], ie_t, preferred_element_type=jnp.float32)
           + b1_ref[...])                            # [H, TB] f32
    h_t = jnp.maximum(h_t, 0.0)                      # ReLU (dropout = identity, eval)

    # fc2: (h @ w2)^T as f32 VPU multiply + sublane reduce -> lane-dense [1, TB].
    out_ref[...] = jnp.sum(h_t * w2_ref[...], axis=0, keepdims=True) + b2_ref[0]


def _pick_batch_tile(batch, requested=None, *, min_tile=128, max_tile=8192,
                     target_tiles=4):
    """Big tiles amortize the ~0.35us per-grid-step cost; >= target_tiles keeps
    both v7x TensorCores busy with >= 2 steps each when the batch is large."""
    if requested is not None:
        bt = int(requested)
    else:
        bt = -(-batch // target_tiles)       # cdiv(batch, target_tiles)
        bt = -(-bt // 128) * 128             # round up to a lane multiple
        bt = max(min_tile, min(max_tile, bt))
    assert bt % 128 == 0, "batch_tile must be a multiple of 128"
    return bt


def prepare_params(params, compute_dtype=jnp.bfloat16):
    """ONE-TIME layout/dtype prep (do NOT call per forward step): transpose the
    tables and W1 halves and cast them to bf16 so no full-table cast/restream
    happens inside the per-call path."""
    E = params["user_emb"].shape[1]
    H = params["w1"].shape[1]
    return {
        "user_tab_t": params["user_emb"].T.astype(compute_dtype),   # [E, NU]
        "item_tab_t": params["item_emb"].T.astype(compute_dtype),   # [E, NI]
        "w1u_t": params["w1"][:E].T.astype(compute_dtype),          # [H, E]
        "w1i_t": params["w1"][E:].T.astype(compute_dtype),          # [H, E]
        "b1_col": params["b1"].reshape(H, 1).astype(jnp.float32),   # [H, 1]
        "w2_col": params["w2"].reshape(H, 1).astype(jnp.float32),   # [H, 1]
        "b2": params["b2"].reshape(1).astype(jnp.float32),          # [1]
    }


def hybrid_cf_forward(u_idx, i_idx, prepped, *, batch_tile=None):
    """Full HybridCF forward (eval mode).  The only per-row HBM traffic is the
    int32 indices in and the f32 scores out; gather + fc1 + ReLU + fc2 all run
    inside the Pallas kernel against VMEM-resident tables/weights."""
    u_tab_t, i_tab_t = prepped["user_tab_t"], prepped["item_tab_t"]
    E, NU = u_tab_t.shape
    _, NI = i_tab_t.shape
    H = prepped["w1u_t"].shape[0]
    B = u_idx.shape[0]

    bt = _pick_batch_tile(B, batch_tile)
    num_tiles = pl.cdiv(B, bt)
    B_pad = num_tiles * bt
    if B_pad != B:
        pad = B_pad - B
        u_idx = jnp.concatenate([u_idx, jnp.zeros((pad,), u_idx.dtype)])
        i_idx = jnp.concatenate([i_idx, jnp.zeros((pad,), i_idx.dtype)])
    u_ids = u_idx.astype(jnp.int32).reshape(1, B_pad)   # lane-dense index stream
    i_ids = i_idx.astype(jnp.int32).reshape(1, B_pad)

    out = pl.pallas_call(
        hybrid_cf_kernel,
        out_shape=jax.ShapeDtypeStruct((1, B_pad), jnp.float32),
        grid_spec=pltpu.PrefetchScalarGridSpec(
            num_scalar_prefetch=0,
            grid=(num_tiles,),
            in_specs=[
                pl.BlockSpec((1, bt), lambda b: (0, b)),      # user indices
                pl.BlockSpec((1, bt), lambda b: (0, b)),      # item indices
                # Constant block index -> Pallas skips re-fetch; tables/weights
                # stay VMEM-resident across all grid steps.
                pl.BlockSpec((E, NU), lambda b: (0, 0)),      # user table^T (bf16)
                pl.BlockSpec((E, NI), lambda b: (0, 0)),      # item table^T (bf16)
                pl.BlockSpec((H, E), lambda b: (0, 0)),       # W1_u^T (bf16)
                pl.BlockSpec((H, E), lambda b: (0, 0)),       # W1_i^T (bf16)
                pl.BlockSpec((H, 1), lambda b: (0, 0)),       # b1 (f32)
                pl.BlockSpec((H, 1), lambda b: (0, 0)),       # w2 (f32)
                pl.BlockSpec(memory_space=pltpu.MemorySpace.SMEM),  # b2 scalar
            ],
            out_specs=pl.BlockSpec((1, bt), lambda b: (0, b)),
        ),
        compiler_params=pltpu.CompilerParams(
            dimension_semantics=("parallel",),
        ),
    )(u_ids, i_ids, u_tab_t, i_tab_t,
      prepped["w1u_t"], prepped["w1i_t"], prepped["b1_col"], prepped["w2_col"],
      prepped["b2"])

    return out[0, :B]   # drop padding; equivalent of .squeeze(1)


def init_params(key, num_users, num_items, embed_dim, hidden_dim):
    """Deterministic synthetic init (xavier_uniform embeddings, PyTorch-style
    uniform for the linear layers). Linear weights stored [in, out]."""
    k1, k2, k3, k4, k5, k6 = jax.random.split(key, 6)

    def xavier_uniform(k, shape):
        fan_in, fan_out = shape[0], shape[1]
        a = jnp.sqrt(6.0 / (fan_in + fan_out))
        return jax.random.uniform(k, shape, jnp.float32, -a, a)

    def linear_init(kw, kb, fan_in, fan_out):
        bound = 1.0 / jnp.sqrt(fan_in)
        w = jax.random.uniform(kw, (fan_in, fan_out), jnp.float32, -bound, bound)
        b = jax.random.uniform(kb, (fan_out,), jnp.float32, -bound, bound)
        return w, b

    user_emb = xavier_uniform(k1, (num_users, embed_dim))
    item_emb = xavier_uniform(k2, (num_items, embed_dim))
    w1, b1 = linear_init(k3, k4, embed_dim * 2, hidden_dim)
    w2, b2 = linear_init(k5, k6, hidden_dim, 1)
    return {
        "user_emb": user_emb, "item_emb": item_emb,
        "w1": w1, "b1": b1, "w2": w2, "b2": b2,
    }


def reference_forward(u_idx, i_idx, params, compute_dtype=jnp.bfloat16):
    """Pure-JAX reference (PyTorch eval-mode forward), using the same bf16
    rounding of tables/W1 as the kernel so results are directly comparable."""
    f32 = jnp.float32
    u_tab = params["user_emb"].astype(compute_dtype).astype(f32)
    i_tab = params["item_emb"].astype(compute_dtype).astype(f32)
    w1 = params["w1"].astype(compute_dtype).astype(f32)
    x = jnp.concatenate([u_tab[u_idx], i_tab[i_idx]], axis=1)
    h = jnp.maximum(x @ w1 + params["b1"], 0.0)
    return jnp.sum(h * params["w2"][:, 0], axis=1) + params["b2"][0]


if __name__ == "__main__":
    key = jax.random.PRNGKey(0)
    num_users, num_items = 64, 128
    embed_dim, hidden_dim = 32, 64
    batch = 300   # not a multiple of the tile -> exercises padding; 3 grid steps

    pkey, ukey, ikey = jax.random.split(key, 3)
    params = init_params(pkey, num_users, num_items, embed_dim, hidden_dim)
    prepped = prepare_params(params)   # one-time bf16 cast + transposed layouts

    u_idx = jax.random.randint(ukey, (batch,), 0, num_users, dtype=jnp.int32)
    i_idx = jax.random.randint(ikey, (batch,), 0, num_items, dtype=jnp.int32)

    fwd = jax.jit(hybrid_cf_forward)
    out = jax.block_until_ready(fwd(u_idx, i_idx, prepped))

    ref = reference_forward(u_idx, i_idx, params)
    assert out.shape == (batch,)
    assert jnp.allclose(out, ref, atol=1e-3, rtol=1e-3), (out, ref)

    print("KERNEL_OK")
</pallas_src>

<mosaic_0001>
module attributes {stable_mosaic.version = 11 : i64} {
  func.func @hybrid_cf_kernel(%arg0: i32, %arg1: memref<1x128xi32, #tpu.memory_space<vmem>>, %arg2: memref<1x128xi32, #tpu.memory_space<vmem>>, %arg3: memref<32x64xbf16, #tpu.memory_space<vmem>>, %arg4: memref<32x128xbf16, #tpu.memory_space<vmem>>, %arg5: memref<64x32xbf16, #tpu.memory_space<vmem>>, %arg6: memref<64x32xbf16, #tpu.memory_space<vmem>>, %arg7: memref<64x1xf32, #tpu.memory_space<vmem>>, %arg8: memref<64x1xf32, #tpu.memory_space<vmem>>, %arg9: memref<1xf32, #tpu.memory_space<smem>>, %arg10: memref<1x128xf32, #tpu.memory_space<vmem>>) attributes {dimension_semantics = [#tpu.dimension_semantics<parallel>], iteration_bounds = array<i64: 3>, scalar_prefetch = 0 : i64, scratch_operands = 0 : i64, tpu.core_type = #tpu.core_type<tc>, window_params = [{transform_indices = @transform_0, window_bounds = array<i64: 1, 128>}, {transform_indices = @transform_1, window_bounds = array<i64: 1, 128>}, {pipeline_mode = #tpu.pipeline_mode<synchronous>, transform_indices = @transform_2, window_bounds = array<i64: 32, 64>}, {pipeline_mode = #tpu.pipeline_mode<synchronous>, transform_indices = @transform_3, window_bounds = array<i64: 32, 128>}, {pipeline_mode = #tpu.pipeline_mode<synchronous>, transform_indices = @transform_4, window_bounds = array<i64: 64, 32>}, {pipeline_mode = #tpu.pipeline_mode<synchronous>, transform_indices = @transform_5, window_bounds = array<i64: 64, 32>}, {pipeline_mode = #tpu.pipeline_mode<synchronous>, transform_indices = @transform_6, window_bounds = array<i64: 64, 1>}, {pipeline_mode = #tpu.pipeline_mode<synchronous>, transform_indices = @transform_7, window_bounds = array<i64: 64, 1>}, {transform_indices = @transform_8, window_bounds = array<i64: 1>}, {transform_indices = @transform_9, window_bounds = array<i64: 1, 128>}]} {
    %c0 = arith.constant 0 : index
    %c0_0 = arith.constant 0 : index
    %0 = vector.load %arg1[%c0, %c0_0] : memref<1x128xi32, #tpu.memory_space<vmem>>, vector<1x128xi32>
    %1 = tpu.iota {dimensions = array<i32: 0>} : vector<64x128xi32>
    %2 = vector.broadcast %0 : vector<1x128xi32> to vector<64x128xi32>
    %3 = arith.cmpi eq, %2, %1 : vector<64x128xi32>
    %cst = arith.constant 1.000000e+00 : f32
    %cst_1 = arith.constant 0.000000e+00 : f32
    %4 = vector.broadcast %cst : f32 to vector<64x128xf32>
    %5 = vector.broadcast %cst_1 : f32 to vector<64x128xf32>
    %6 = arith.select %3, %4, %5 : vector<64x128xi1>, vector<64x128xf32>
    %7 = arith.truncf %6 : vector<64x128xf32> to vector<64x128xbf16>
    %c0_2 = arith.constant 0 : index
    %c0_3 = arith.constant 0 : index
    %8 = vector.load %arg3[%c0_2, %c0_3] : memref<32x64xbf16, #tpu.memory_space<vmem>>, vector<32x64xbf16>
    %cst_4 = arith.constant dense<0.000000e+00> : vector<32x128xf32>
    %9 = tpu.matmul %8, %7, %cst_4 {dimension_numbers = #tpu.dot_dimension_numbers<[1], [0], [0], [1], [0, 0, 1, 1], [], []>} : vector<32x64xbf16>, vector<64x128xbf16>, vector<32x128xf32> -> vector<32x128xf32>
    %10 = arith.truncf %9 : vector<32x128xf32> to vector<32x128xbf16>
    %c0_5 = arith.constant 0 : index
    %c0_6 = arith.constant 0 : index
    %11 = vector.load %arg2[%c0_5, %c0_6] : memref<1x128xi32, #tpu.memory_space<vmem>>, vector<1x128xi32>
    %12 = tpu.iota {dimensions = array<i32: 0>} : vector<128x128xi32>
    %13 = vector.broadcast %11 : vector<1x128xi32> to vector<128x128xi32>
    %14 = arith.cmpi eq, %13, %12 : vector<128x128xi32>
    %cst_7 = arith.constant 1.000000e+00 : f32
    %cst_8 = arith.constant 0.000000e+00 : f32
    %15 = vector.broadcast %cst_7 : f32 to vector<128x128xf32>
    %16 = vector.broadcast %cst_8 : f32 to vector<128x128xf32>
    %17 = arith.select %14, %15, %16 : vector<128x128xi1>, vector<128x128xf32>
    %18 = arith.truncf %17 : vector<128x128xf32> to vector<128x128xbf16>
    %c0_9 = arith.constant 0 : index
    %c0_10 = arith.constant 0 : index
    %19 = vector.load %arg4[%c0_9, %c0_10] : memref<32x128xbf16, #tpu.memory_space<vmem>>, vector<32x128xbf16>
    %cst_11 = arith.constant dense<0.000000e+00> : vector<32x128xf32>
    %20 = tpu.matmul %19, %18, %cst_11 {dimension_numbers = #tpu.dot_dimension_numbers<[1], [0], [0], [1], [0, 0, 1, 1], [], []>} : vector<32x128xbf16>, vector<128x128xbf16>, vector<32x128xf32> -> vector<32x128xf32>
    %21 = arith.truncf %20 : vector<32x128xf32> to vector<32x128xbf16>
    %c0_12 = arith.constant 0 : index
    %c0_13 = arith.constant 0 : index
    %22 = vector.load %arg5[%c0_12, %c0_13] : memref<64x32xbf16, #tpu.memory_space<vmem>>, vector<64x32xbf16>
    %cst_14 = arith.constant dense<0.000000e+00> : vector<64x128xf32>
    %23 = tpu.matmul %22, %10, %cst_14 {dimension_numbers = #tpu.dot_dimension_numbers<[1], [0], [0], [1], [0, 0, 1, 1], [], []>} : vector<64x32xbf16>, vector<32x128xbf16>, vector<64x128xf32> -> vector<64x128xf32>
    %c0_15 = arith.constant 0 : index
    %c0_16 = arith.constant 0 : index
    %24 = vector.load %arg6[%c0_15, %c0_16] : memref<64x32xbf16, #tpu.memory_space<vmem>>, vector<64x32xbf16>
    %cst_17 = arith.constant dense<0.000000e+00> : vector<64x128xf32>
    %25 = tpu.matmul %24, %21, %cst_17 {dimension_numbers = #tpu.dot_dimension_numbers<[1], [0], [0], [1], [0, 0, 1, 1], [], []>} : vector<64x32xbf16>, vector<32x128xbf16>, vector<64x128xf32> -> vector<64x128xf32>
    %26 = arith.addf %23, %25 : vector<64x128xf32>
    %c0_18 = arith.constant 0 : index
    %c0_19 = arith.constant 0 : index
    %27 = vector.load %arg7[%c0_18, %c0_19] : memref<64x1xf32, #tpu.memory_space<vmem>>, vector<64x1xf32>
    %28 = vector.broadcast %27 : vector<64x1xf32> to vector<64x128xf32>
    %29 = arith.addf %26, %28 : vector<64x128xf32>
    %cst_20 = arith.constant 0.000000e+00 : f32
    %30 = vector.broadcast %cst_20 : f32 to vector<64x128xf32>
    %31 = arith.maximumf %29, %30 : vector<64x128xf32>
    %c0_21 = arith.constant 0 : index
    %c0_22 = arith.constant 0 : index
    %32 = vector.load %arg8[%c0_21, %c0_22] : memref<64x1xf32, #tpu.memory_space<vmem>>, vector<64x1xf32>
    %33 = vector.broadcast %32 : vector<64x1xf32> to vector<64x128xf32>
    %34 = arith.mulf %31, %33 : vector<64x128xf32>
    %cst_23 = arith.constant dense<0.000000e+00> : vector<128xf32>
    %35 = vector.multi_reduction <add>, %34, %cst_23 [0] : vector<64x128xf32> to vector<128xf32>
    %36 = vector.shape_cast %35 : vector<128xf32> to vector<1x128xf32>
    %c0_24 = arith.constant 0 : index
    %37 = memref.load %arg9[%c0_24] : memref<1xf32, #tpu.memory_space<smem>>
    %38 = vector.broadcast %37 : f32 to vector<1x128xf32>
    %39 = arith.addf %36, %38 : vector<1x128xf32>
    %c0_25 = arith.constant 0 : index
    %c0_26 = arith.constant 0 : index
    %40 = vector.load %arg10[%c0_25, %c0_26] : memref<1x128xf32, #tpu.memory_space<vmem>>, vector<1x128xf32>
    tpu.vector_store %arg10[%c0_25, %c0_26], %39 {strides = array<i32>} : memref<1x128xf32, #tpu.memory_space<vmem>>, vector<1x128xf32>,
    return
  }
  func.func @transform_0(%arg0: i32) -> (i32, i32) {
    %c0_i32 = arith.constant 0 : i32
    %c0_i32_0 = arith.constant 0 : i32
    return %c0_i32, %arg0 : i32, i32
  }
  func.func @transform_1(%arg0: i32) -> (i32, i32) {
    %c0_i32 = arith.constant 0 : i32
    %c0_i32_0 = arith.constant 0 : i32
    return %c0_i32, %arg0 : i32, i32
  }
  func.func @transform_2(%arg0: i32) -> (i32, i32) {
    %c0_i32 = arith.constant 0 : i32
    %c0_i32_0 = arith.constant 0 : i32
    %c0_i32_1 = arith.constant 0 : i32
    return %c0_i32, %c0_i32_0 : i32, i32
  }
  func.func @transform_3(%arg0: i32) -> (i32, i32) {
    %c0_i32 = arith.constant 0 : i32
    %c0_i32_0 = arith.constant 0 : i32
    %c0_i32_1 = arith.constant 0 : i32
    return %c0_i32, %c0_i32_0 : i32, i32
  }
  func.func @transform_4(%arg0: i32) -> (i32, i32) {
    %c0_i32 = arith.constant 0 : i32
    %c0_i32_0 = arith.constant 0 : i32
    %c0_i32_1 = arith.constant 0 : i32
    return %c0_i32, %c0_i32_0 : i32, i32
  }
  func.func @transform_5(%arg0: i32) -> (i32, i32) {
    %c0_i32 = arith.constant 0 : i32
    %c0_i32_0 = arith.constant 0 : i32
    %c0_i32_1 = arith.constant 0 : i32
    return %c0_i32, %c0_i32_0 : i32, i32
  }
  func.func @transform_6(%arg0: i32) -> (i32, i32) {
    %c0_i32 = arith.constant 0 : i32
    %c0_i32_0 = arith.constant 0 : i32
    %c0_i32_1 = arith.constant 0 : i32
    return %c0_i32, %c0_i32_0 : i32, i32
  }
  func.func @transform_7(%arg0: i32) -> (i32, i32) {
    %c0_i32 = arith.constant 0 : i32
    %c0_i32_0 = arith.constant 0 : i32
    %c0_i32_1 = arith.constant 0 : i32
    return %c0_i32, %c0_i32_0 : i32, i32
  }
  func.func @transform_8(%arg0: i32) -> i32 {
    %c0_i32 = arith.constant 0 : i32
    %c0_i32_0 = arith.constant 0 : i32
    return %c0_i32 : i32
  }
  func.func @transform_9(%arg0: i32) -> (i32, i32) {
    %c0_i32 = arith.constant 0 : i32
    %c0_i32_0 = arith.constant 0 : i32
    return %c0_i32, %arg0 : i32, i32
  }
}

</mosaic_0001>

<bundles_post_ra>
// kernel: hybrid_cf_forward.1
= control target key start
LH: loop header
LB: loop body
LE: loop exit
PB: predicated region body
PF: predicated region fallthrough
CT: control target
= control target key end

     0   :  { %s1204_s11 = smov 0   ;;  %s1416_s0 = inlined_call_operand.vmem [shape: s32[1,384], index: 0, kind: input, shape index: {}]   ;;  %s1417_s1 = inlined_call_operand.vmem [shape: s32[1,384], index: 1, kind: input, shape index: {}]   ;;  %s1418_s2 = inlined_call_operand.vmem [shape: bf16[32,64], index: 2, kind: input, shape index: {}]   ;;  %s1419_s3 = inlined_call_operand.vmem [shape: bf16[32,128], index: 3, kind: input, shape index: {}]   ;;  %s1420_s4 = inlined_call_operand.vmem [shape: bf16[64,32], index: 4, kind: input, shape index: {}]   ;;  %s1421_s5 = inlined_call_operand.vmem [shape: bf16[64,32], index: 5, kind: input, shape index: {}]   ;;  %s1422_s6 = inlined_call_operand.vmem [shape: f32[64,1], index: 6, kind: input, shape index: {}]   ;;  %s1423_s7 = inlined_call_operand.vmem [shape: f32[64,1], index: 7, kind: input, shape index: {}]   ;;  %s1424_s8 = inlined_call_operand.<no memory space> [shape: f32[1], index: 8, kind: input, shape index: {}]   ;;  %s1425_s9 = inlined_call_operand.vmem [shape: f32[1,384], index: 9, kind: output, shape index: {}]  }
   0x1   :  { %14 = sst [smem:[#allocation2]] %s1424_s8 }
   0x2 LB: > { %s966_s12 = sadd.s32 4294967295, %s1147_s11   ;;  %p970_p0 = scmp.ge.s32.totalorder %s1147_s11, 1  ;;  %s1147_s11 = sphi %s1204_s11, %s20_s11  }
   0x3   : > { %p294_p1 = scmp.lt.s32.totalorder %s1147_s11, 4 }
   0x5   : > { %p295_p2 = pnand %p970_p0, %p294_p1 }
   0x6   : > { %p329_p3 = scmp.lt.s32.totalorder (!%p295_p2), %s966_s12, 2  ;;  %v340_v0 = vlaneseq (!%p295_p2)  ;;  %v1129_v1 = vld [vmem:[%s1419_s3] sm:$0xff] (!%p295_p2)   ;;  %vm387_vm0 = vcmask (!%p295_p2), 523264   ;;  %v1149_v13 = vmov (!%p295_p2), 1.0|1.0   ;;  %v1132_v26 = vld [vmem:[%s1418_s2 + $0x8] sm:$0xff] (!%p295_p2)  }
   0x7   : > { %298 = sbr.rel (%p295_p2) target bundleno = 540 (0x21c), region = 56  ;;  %1077 = vmatprep.mubr.bf16.mxu1 (!%p295_p2), %v1129_v1  ;;  %v1131_v3 = vld [vmem:[%s1418_s2] sm:$0xff] (!%p295_p2)   ;;  %v1130_v27 = vld [vmem:[%s1419_s3 + $0x8] sm:$0xff] (!%p295_p2)   ;;  %v1137_v29 = vld [vmem:[%s1421_s5 + $0x10] sm:$0xff] (!%p295_p2)   ;;  %v1150_v32 = vmov (!%p295_p2), 0   ;;  %s909_s8 = sld [smem:[#allocation2]] (!%p295_p2) }
   0x8   : > { %v1217_v2 = vshrl.u32 (!%p295_p2), %v340_v0, 7  ;;  %1057 = vmatprep.mubr.msk.bf16.mxu0 (!%p295_p2), %vm387_vm0, %v1131_v3  ;;  %v1133_v28 = vld [vmem:[%s1421_s5] sm:$0xff] (!%p295_p2)   ;;  %v778_v31 = vld [vmem:[%s1422_s6 + $0x10] sm:$0xff] (!%p295_p2)  ;;  %1127 = vset.pattern.permute.xlu0 (!%p295_p2), %v1150_v32  ;;  %v777_v33 = vld [vmem:[%s1422_s6 + $0x8] sm:$0xff] (!%p295_p2) }
   0x9   : > { %v776_v30 = vld [vmem:[%s1422_s6] sm:$0xff] (!%p295_p2)  ;;  %1128 = vset.pattern.permute.xlu1 (!%p295_p2), %v1150_v32  ;;  %v779_v34 = vld [vmem:[%s1422_s6 + $0x18] sm:$0xff] (!%p295_p2)  ;;  %v841_v36 = vld [vmem:[%s1423_s7 + $0x8] sm:$0xff] (!%p295_p2) }
   0xa   : > { %v342_v4 = vadd.s32 (!%p295_p2), 8, %v1217_v2  ;;  %v343_v5 = vadd.s32 (!%p295_p2), 16, %v1217_v2  ;;  %v344_v6 = vadd.s32 (!%p295_p2), 24, %v1217_v2  ;;  %v345_v7 = vadd.s32 (!%p295_p2), 32, %v1217_v2  ;;  %786 = vperm.xlu0 (!%p295_p2), %1127, %v776_v30   ;;  %796 = vperm.xlu1 (!%p295_p2), %1128, %v778_v31   ;;  %v840_v35 = vld [vmem:[%s1423_s7] sm:$0xff] (!%p295_p2)  ;;  %v842_v38 = vld [vmem:[%s1423_s7 + $0x10] sm:$0xff] (!%p295_p2) }
   0xb   : > { %v346_v9 = vadd.s32 (!%p295_p2), 40, %v1217_v2  ;;  %v347_v11 = vadd.s32 (!%p295_p2), 48, %v1217_v2  ;;  %v348_v12 = vadd.s32 (!%p295_p2), 56, %v1217_v2  ;;  %v446_v15 = vadd.s32 (!%p295_p2), 64, %v1217_v2  ;;  %v780_v37 = vld [vmem:[%s1422_s6 + $0x20] sm:$0xff] (!%p295_p2)  ;;  %v781_v39 = vld [vmem:[%s1422_s6 + $0x28] sm:$0xff] (!%p295_p2) }
   0xc   : > { %v447_v16 = vadd.s32 (!%p295_p2), 72, %v1217_v2  ;;  %v448_v18 = vadd.s32 (!%p295_p2), 80, %v1217_v2  ;;  %v449_v19 = vadd.s32 (!%p295_p2), 88, %v1217_v2  ;;  %v450_v22 = vadd.s32 (!%p295_p2), 96, %v1217_v2  ;;  %v843_v40 = vld [vmem:[%s1423_s7 + $0x18] sm:$0xff] (!%p295_p2)  ;;  %v782_v41 = vld [vmem:[%s1422_s6 + $0x30] sm:$0xff] (!%p295_p2) }
   0xd   : > { %v451_v23 = vadd.s32 (!%p295_p2), 104, %v1217_v2  ;;  %v452_v24 = vadd.s32 (!%p295_p2), 112, %v1217_v2  ;;  %v453_v25 = vadd.s32 (!%p295_p2), 120, %v1217_v2  ;;  %v844_v42 = vld [vmem:[%s1423_s7 + $0x20] sm:$0xff] (!%p295_p2)  ;;  %v783_v43 = vld [vmem:[%s1422_s6 + $0x38] sm:$0xff] (!%p295_p2)  ;;  %v845_v44 = vld [vmem:[%s1423_s7 + $0x28] sm:$0xff] (!%p295_p2) }
   0xe   : > { %s1435_s12 = smov (!%p329_p3, %s966_s12), 2  ;;  %791 = vperm.xlu0 %1127, %v777_v33   ;;  %801 = vperm.xlu1 %1128, %v779_v34   ;;  %v846_v45 = vld [vmem:[%s1423_s7 + $0x30] sm:$0xff]  ;;  %v847_v46 = vld [vmem:[%s1423_s7 + $0x38] sm:$0xff]  ;;  %v1134_v59 = vld [vmem:[%s1421_s5 + $0x8] sm:$0xff]  }
   0xf   : > { %s334_s18 = scalar_lea.vmem %s1417_s1, %s1435_s12  ;;  %s331_s21 = scalar_lea.vmem %s1416_s0, %s1435_s12  ;;  %v1138_v60 = vld [vmem:[%s1421_s5 + $0x18] sm:$0xff]   ;;  %v1135_v61 = vld [vmem:[%s1420_s4] sm:$0xff]   ;;  %v1136_v62 = vld [vmem:[%s1420_s4 + $0x8] sm:$0xff]  }
  0x10   : > { %v1235_v8 = vld [vmem:[%s334_s18] ss:$0 sm:$0xff]  ;;  %v1139_v63 = vld [vmem:[%s1420_s4 + $0x10] sm:$0xff]   ;;  %v1140_v0 = vld [vmem:[%s1420_s4 + $0x18] sm:$0xff]   ;;  %s337_s17 = scalar_lea.vmem %s1425_s9, %s1435_s12 }
  0x11   : > { %vm458_vm1 = vcmp.eq.s32.totalorder %v1235_v8, %v1217_v2  ;;  %vm459_vm2 = vcmp.eq.s32.totalorder %v1235_v8, %v342_v4  ;;  %vm460_vm3 = vcmp.eq.s32.totalorder %v1235_v8, %v343_v5  ;;  %vm461_vm4 = vcmp.eq.s32.totalorder %v1235_v8, %v344_v6  ;;  %v971_v10 = vld [vmem:[%s331_s21] ss:$0 sm:$0xff] }
  0x12   : > { %vm987_vm5 = vmpackc.low %vm459_vm2, %vm458_vm1  ;;  %vm462_vm7 = vcmp.eq.s32.totalorder %v1235_v8, %v345_v7  ;;  %vm463_vm8 = vcmp.eq.s32.totalorder %v1235_v8, %v346_v9  ;;  %vm353_vm9 = vcmp.eq.s32.totalorder %v971_v10, %v1217_v2  ;;  %vm354_vm10 = vcmp.eq.s32.totalorder %v971_v10, %v342_v4  ;;  %850 = vperm.xlu0 %1127, %v840_v35  }
  0x13   : > { %1061 = vmatprep.subr.msk.bf16.mxu1 %vm987_vm5, %v1149_v13  ;;  %vm989_vm6 = vmpackc.low %vm461_vm4, %vm460_vm3  ;;  %vm464_vm12 = vcmp.eq.s32.totalorder %v1235_v8, %v347_v11  ;;  %vm465_vm13 = vcmp.eq.s32.totalorder %v1235_v8, %v348_v12  ;;  %vm355_vm14 = vcmp.eq.s32.totalorder %v971_v10, %v343_v5  ;;  %vm356_vm15 = vcmp.eq.s32.totalorder %v971_v10, %v344_v6 }
  0x14   : > { %1062 = vmatpush3.bf16.msk.msra.mxu1 %vm987_vm5, %v1149_v13  ;;  %vm1251_vm11 = vmpackc.low %vm463_vm8, %vm462_vm7  ;;  %vm357_vm3 = vcmp.eq.s32.totalorder %v971_v10, %v345_v7  ;;  %vm358_vm4 = vcmp.eq.s32.totalorder %v971_v10, %v346_v9  ;;  %vm466_vm7 = vcmp.eq.s32.totalorder %v1235_v8, %v446_v15  ;;  %855 = vperm.xlu1 %1128, %v841_v36  }
  0x15   : > { %1063 = vmatprep.subr.msk.bf16.mxu1 %vm989_vm6, %v1149_v13  ;;  %vm974_vm1 = vmpackc.low %vm354_vm10, %vm353_vm9  ;;  %vm359_vm9 = vcmp.eq.s32.totalorder %v971_v10, %v347_v11  ;;  %vm360_vm10 = vcmp.eq.s32.totalorder %v971_v10, %v348_v12 }
  0x16   : > { %vm1263_vm2 = vmpackc.low %vm465_vm13, %vm464_vm12  ;;  %1049 = vmatprep.subr.msk.bf16.mxu0 %vm974_vm1, %v1149_v13  ;;  %vm468_vm13 = vcmp.eq.s32.totalorder %v1235_v8, %v448_v18  ;;  %806 = vperm.xlu0 %1127, %v780_v37  }
  0x17   : > { %1050 = vmatpush3.bf16.msk.msra.mxu0 %vm974_vm1, %v1149_v13  ;;  %vm976_vm5 = vmpackc.low %vm356_vm15, %vm355_vm14  ;;  %vm470_vm1 = vcmp.eq.s32.totalorder %v1235_v8, %v450_v22 }
  0x18   : > { %1064 = vmatpush3.bf16.msk.msra.mxu1 %vm989_vm6, %v1149_v13  ;;  %vm467_vm6 = vcmp.eq.s32.totalorder %v1235_v8, %v447_v16  ;;  %1051 = vmatprep.subr.msk.bf16.mxu0 %vm976_vm5, %v1149_v13  ;;  %vm1277_vm8 = vmpackc.low %vm358_vm4, %vm357_vm3  ;;  %vm471_vm3 = vcmp.eq.s32.totalorder %v1235_v8, %v451_v23  ;;  %vm472_vm4 = vcmp.eq.s32.totalorder %v1235_v8, %v452_v24 }
  0x19   : > { %1065 = vmatprep.subr.msk.bf16.mxu1 %vm1251_vm11, %v1149_v13  ;;  %vm1284_vm12 = vmpackc.low %vm467_vm6, %vm466_vm7  ;;  %vm601_vm6 = vcmask 261120   ;;  %860 = vperm.xlu1 %1128, %v842_v38  }
  0x1a   : > { %vm980_vm14 = vmpackc.low %vm360_vm10, %vm359_vm9  ;;  %811 = vperm.xlu0 %1127, %v781_v39  }
  0x1b   : > { %1052 = vmatpush3.bf16.msk.msra.mxu0 %vm976_vm5, %v1149_v13  ;;  %vm473_vm5 = vcmp.eq.s32.totalorder %v1235_v8, %v453_v25 }
  0x1c   : > { %1066 = vmatpush3.bf16.msk.msra.mxu1 %vm1251_vm11, %v1149_v13  ;;  %vm469_vm11 = vcmp.eq.s32.totalorder %v1235_v8, %v449_v19  ;;  %1053 = vmatprep.subr.msk.bf16.mxu0 %vm1277_vm8, %v1149_v13  ;;  %vm1001_vm7 = vmpackc.low %vm473_vm5, %vm472_vm4 }
  0x1d   : > { %1067 = vmatprep.subr.msk.bf16.mxu1 %vm1263_vm2, %v1149_v13  ;;  %vm997_vm15 = vmpackc.low %vm469_vm11, %vm468_vm13  ;;  %865 = vperm.xlu1 %1128, %v843_v40  }
  0x1e   : > { %816 = vperm.xlu0 %1127, %v782_v41  }
  0x1f   : > { %1054 = vmatpush3.bf16.msk.msra.mxu0 %vm1277_vm8, %v1149_v13 }
  0x20   : > { %1068 = vmatpush3.bf16.msk.msra.mxu1 %vm1263_vm2, %v1149_v13  ;;  %1055 = vmatprep.subr.msk.bf16.mxu0 %vm980_vm14, %v1149_v13  ;;  %vm999_vm2 = vmpackc.low %vm471_vm3, %vm470_vm1 }
  0x21   : > { %1069 = vmatprep.subr.msk.bf16.mxu1 %vm1284_vm12, %v1149_v13  ;;  %870 = vperm.xlu1 %1128, %v844_v42  }
  0x22   : > { %821 = vperm.xlu0 %1127, %v783_v43  }
  0x23   : > { %1056 = vmatpush3.bf16.msk.msra.mxu0 %vm980_vm14, %v1149_v13 }
  0x24   : > { %1070 = vmatpush3.bf16.msk.msra.mxu1 %vm1284_vm12, %v1149_v13 }
  0x25   : > { %1071 = vmatprep.subr.msk.bf16.mxu1 %vm997_vm15, %v1149_v13  ;;  %875 = vperm.xlu1 %1128, %v845_v44  }
  0x26   : > { %1058 = vmatmul.mubr.msk.bf16.vlgmr.msra.gmra.mrb[0].mxu0 %vm387_vm0, %v1132_v26  ;;  %880 = vperm.xlu0 %1127, %v846_v45  }
  0x27   : > { %1085 = vmatprep.mubr.msk.bf16.mxu0 %vm601_vm6, %v1133_v28 }
  0x28   : > { %1072 = vmatpush3.bf16.msk.msra.mxu1 %vm997_vm15, %v1149_v13 }
  0x29   : > { %1073 = vmatprep.subr.msk.bf16.mxu1 %vm999_vm2, %v1149_v13  ;;  %885 = vperm.xlu1 %1128, %v847_v46  }
  0x2c   : > { %1074 = vmatpush3.bf16.msk.msra.mxu1 %vm999_vm2, %v1149_v13 }
  0x2d   : > { %1075 = vmatprep.subr.msk.bf16.mxu1 %vm1001_vm7, %v1149_v13 }
  0x30   : > { %1076 = vmatpush3.bf16.msk.msra.mxu1 %vm1001_vm7, %v1149_v13 }
  0x33   : > { %1078 = vmatmul.mubr.bf16.vlgmr.msra.gmra.mrb[0].mxu1 %v1130_v27 }
  0x34   : > { %1089 = vmatprep.mubr.msk.bf16.mxu1 %vm601_vm6, %v1137_v29 }
  0x89   : > { %v787_v1 = vpop.permute.xlu0 %786  ;;  %v797_v2 = vpop.permute.xlu1 %796 }
  0x8d   : > { %v792_v3 = vpop.permute.xlu0 %791  ;;  %v802_v4 = vpop.permute.xlu1 %801 }
  0x91   : > { %v851_v6 = vpop.permute.xlu0 %850 }
  0x93   : > { %v856_v9 = vpop.permute.xlu1 %855 }
  0x95   : > { %v807_v11 = vpop.permute.xlu0 %806 }
  0x98   : > { %v861_v12 = vpop.permute.xlu1 %860 }
  0x99   : > { %v812_v14 = vpop.permute.xlu0 %811 }
  0x9c   : > { %v866_v19 = vpop.permute.xlu1 %865 }
  0x9d   : > { %v817_v26 = vpop.permute.xlu0 %816 }
  0xa0   : > { %v871_v31 = vpop.permute.xlu1 %870 }
  0xa1   : > { %v822_v45 = vpop.permute.xlu0 %821 }
  0xf9   : > { %v1059_v47 = vpop.f32.mrb[0].mxu0 }
  0xfa   : > { %v428_v48 = vpop.f32.mrb[1].mxu0 }
  0xfb   : > { %v1060_v49 = vpop.f32.mrb[2].mxu0 }
  0xfc   : > { %v444_v50 = vpack.c.bf16 %v1060_v49, %v1059_v47  ;;  %v431_v51 = vpop.f32.mrb[3].mxu0 }
  0xfd   : > { %v443_v52 = vpack.c.bf16 %v431_v51, %v428_v48 }
 0x106   : > { %v1079_v53 = vpop.f32.mrb[0].mxu1 }
 0x107   : > { %v548_v54 = vpop.f32.mrb[1].mxu1 }
 0x108   : > { %v1080_v55 = vpop.f32.mrb[2].mxu1 }
 0x109   : > { %v564_v56 = vpack.c.bf16 %v1080_v55, %v1079_v53  ;;  %v551_v57 = vpop.f32.mrb[3].mxu1 }
 0x10a   : > { %v563_v58 = vpack.c.bf16 %v551_v57, %v548_v54  ;;  %v881_v57 = vpop.permute.xlu0 %880 }
 0x10c   : > { %1081 = vmatprep.subr.bf16.mxu0 %v563_v58  ;;  %1105 = vmatprep.subr.bf16.mxu1 %v563_v58 }
 0x10d   : > { %1082 = vmatpush3.bf16.msra.mxu0 %v563_v58  ;;  %1107 = vmatpush3.bf16.msra.mxu1 %v563_v58 }
 0x10e   : > { %1083 = vmatprep.subr.bf16.mxu0 %v564_v56  ;;  %1106 = vmatprep.subr.bf16.mxu1 %v564_v56 }
 0x111   : > { %1084 = vmatpush3.bf16.msra.mxu0 %v564_v56  ;;  %1108 = vmatpush3.bf16.msra.mxu1 %v564_v56 }
 0x112   : > { %1093 = vmatprep.subr.bf16.mxu0 %v443_v52 }
 0x114   : > { %1086 = vmatmul.mubr.msk.bf16.vlgmr.msra.gmra.mrb[4].mxu0 %vm601_vm6, %v1134_v59  ;;  %1090 = vmatmul.mubr.msk.bf16.vlgmr.msra.gmra.mrb[4].mxu1 %vm601_vm6, %v1138_v60 }
 0x115   : > { %1094 = vmatpush3.bf16.msra.mxu0 %v443_v52  ;;  %1097 = vmatprep.mubr.msk.bf16.mxu0 %vm601_vm6, %v1135_v61 }
 0x116   : > { %1095 = vmatprep.subr.bf16.mxu0 %v444_v50 }
 0x119   : > { %1096 = vmatpush3.bf16.msra.mxu0 %v444_v50  ;;  %v876_v50 = vpop.permute.xlu1 %875 }
 0x11d   : > { %v886_v60 = vpop.permute.xlu1 %885 }
 0x120   : > { %1098 = vmatmul.mubr.msk.bf16.vlgmr.msra.gmra.mrb[4].mxu0 %vm601_vm6, %v1136_v62 }
 0x121   : > { %1101 = vmatprep.mubr.msk.bf16.mxu0 %vm601_vm6, %v1139_v63 }
 0x128   : > { %1102 = vmatmul.mubr.msk.bf16.gmra.mrb[8].mxu0 %vm601_vm6, %v1140_v0 }
 0x1e7   : > { %v1091_v5 = vpop.f32.mrb[4].mxu1 }
 0x1e8   : > { %v664_v7 = vpop.f32.mrb[5].mxu1 }
 0x1e9   : > { %v1092_v8 = vpop.f32.mrb[6].mxu1 }
 0x1ea   : > { %v667_v10 = vpop.f32.mrb[7].mxu1 }
 0x1f3   : > { %v1099_v13 = vpop.f32.mrb[4].mxu0 }
 0x1f4   : > { %v745_v15 = vpop.f32.mrb[5].mxu0  ;;  %v826_v16 = vadd.f32 %v1099_v13, %v797_v2 }
 0x1f5   : > { %v824_v17 = vadd.f32 %v787_v1, %v745_v15  ;;  %v1100_v18 = vpop.f32.mrb[6].mxu0 }
 0x1f6   : > { %v827_v20 = vadd.f32 %v1100_v18, %v802_v4  ;;  %v748_v21 = vpop.f32.mrb[7].mxu0  ;;  %v834_v24 = vmax.f32 %v826_v16, 0.0 }
 0x1f7   : > { %v832_v22 = vmax.f32 %v824_v17, 0.0  ;;  %v825_v23 = vadd.f32 %v792_v3, %v748_v21 }
 0x1f8   : > { %v835_v27 = vmax.f32 %v827_v20, 0.0  ;;  %v890_v34 = vmul.f32 %v861_v12, %v834_v24 }
 0x1f9   : > { %v833_v25 = vmax.f32 %v825_v23, 0.0  ;;  %v888_v28 = vmul.f32 %v851_v6, %v832_v22 }
 0x1fa   : > { %v891_v38 = vmul.f32 %v866_v19, %v835_v27 }
 0x1fb   : > { %v889_v29 = vmul.f32 %v856_v9, %v833_v25  ;;  %v1103_v30 = vpop.f32.mrb[8].mxu0 }
 0x1fc   : > { %v770_v32 = vadd.f32 %v1103_v30, %v1091_v5  ;;  %v761_v33 = vpop.f32.mrb[9].mxu0  ;;  %v910_v5 = vstv %s909_s8 }
 0x1fd   : > { %v896_v35 = vadd.f32 %v889_v29, %v888_v28  ;;  %v762_v36 = vadd.f32 %v761_v33, %v664_v7  ;;  %v1104_v37 = vpop.f32.mrb[10].mxu0 }
 0x1fe   : > { %v773_v39 = vadd.f32 %v1104_v37, %v1092_v8  ;;  %v764_v40 = vpop.f32.mrb[11].mxu0  ;;  %v830_v42 = vadd.f32 %v817_v26, %v770_v32 }
 0x1ff   : > { %v897_v41 = vadd.f32 %v896_v35, %v890_v34  ;;  %v828_v43 = vadd.f32 %v807_v11, %v762_v36  ;;  %v765_v44 = vadd.f32 %v764_v40, %v667_v10 }
 0x200   : > { %v831_v48 = vadd.f32 %v822_v45, %v773_v39  ;;  %v838_v51 = vmax.f32 %v830_v42, 0.0 }
 0x201   : > { %v836_v46 = vmax.f32 %v828_v43, 0.0  ;;  %v898_v47 = vadd.f32 %v897_v41, %v891_v38  ;;  %v829_v49 = vadd.f32 %v812_v14, %v765_v44 }
 0x202   : > { %v839_v55 = vmax.f32 %v831_v48, 0.0  ;;  %v894_v58 = vmul.f32 %v881_v57, %v838_v51 }
 0x203   : > { %v892_v52 = vmul.f32 %v871_v31, %v836_v46  ;;  %v837_v53 = vmax.f32 %v829_v49, 0.0 }
 0x204   : > { %v895_v61 = vmul.f32 %v886_v60, %v839_v55 }
 0x205   : > { %v899_v54 = vadd.f32 %v898_v47, %v892_v52  ;;  %v893_v56 = vmul.f32 %v876_v50, %v837_v53 }
 0x207   : > { %v900_v59 = vadd.f32 %v899_v54, %v893_v56 }
 0x209   : > { %v901_v62 = vadd.f32 %v900_v59, %v894_v58 }
 0x20b   : > { %v902_v63 = vadd.f32 %v901_v62, %v895_v61 }
 0x20d   : > { %v903_v0 = vrot.slane %v902_v63, 4 }
 0x20f   : > { %v904_v1 = vadd.f32 %v903_v0, %v902_v63 }
 0x211   : > { %v905_v2 = vrot.slane %v904_v1, 2 }
 0x213   : > { %v906_v3 = vadd.f32 %v905_v2, %v904_v1 }
 0x215   : > { %v907_v4 = vrot.slane %v906_v3, 1 }
 0x217   : > { %v908_v6 = vadd.f32 %v907_v4, %v906_v3 }
 0x219   : > { %v911_v7 = vadd.f32 %v910_v5, %v908_v6 }
 0x21b   : > { %912 = vst [vmem:[%s337_s17] sm:$0x1] %v911_v7 }
 0x21c PF: > { %s20_s11 = sadd.s32 1, %s1147_s11  }
 0x21d   : > { %p17_p4 = scmp.ge.s32.totalorder %s20_s11, 5  }
 0x21f   :  { %19 = sbr.rel (!%p17_p4) target bundleno = 2 (0x2), region = 89 }

</bundles_post_ra>
